<compile_context>
chip_gen: v7x
topology: tpu7x:2x2x1
jax: 0.10.0
libtpu: 0.0.40
codegen_flags: <defaults>
</compile_context>

<pallas_src>
import math

import jax
import jax.numpy as jnp
from jax.experimental import pallas as pl
from jax.experimental.pallas import tpu as pltpu


_MXU_DTYPE = jnp.bfloat16          # MXU operand / HBM storage dtype (f32 accumulation)
_ACT_DTYPE = jnp.bfloat16          # inter-kernel activation dtype
_LN_EPS = 1e-5
_VMEM_LIMIT = 64 * 1024 * 1024     # <= physical VMEM on every generation (v7x: 64 MiB)
_VMEM_BUDGET = 20 * 1024 * 1024    # target working set used to size the row tile
_MAX_ROW_TILE = 512                # rows/step cap (multiple of 8, ~85% HBM roofline)


# --------------------------------------------------------------------------
# Fused dense kernel: [LayerNorm] -> matmul -> [+bias] -> [GELU] -> [+residual]
# --------------------------------------------------------------------------

def _make_fused_linear_kernel(*, ln, bias, gelu, residual):
    inv_sqrt2 = 1.0 / math.sqrt(2.0)

    def kernel(*refs):
        it = iter(refs)
        x_ref = next(it)
        g_ref = next(it) if ln else None
        b_ref = next(it) if ln else None
        w_ref = next(it)
        wb_ref = next(it) if bias else None
        r_ref = next(it) if residual else None
        o_ref = next(it)

        x = x_ref[...]
        if ln:
            xf = x.astype(jnp.float32)                      # LN stats in f32
            mean = jnp.mean(xf, axis=-1, keepdims=True)
            var = jnp.mean((xf - mean) ** 2, axis=-1, keepdims=True)
            xn = (xf - mean) * jax.lax.rsqrt(var + _LN_EPS)
            xn = xn * g_ref[...] + b_ref[...]               # bf16 gamma/beta promote
            x_mxu = xn.astype(_MXU_DTYPE)
        else:
            x_mxu = x.astype(_MXU_DTYPE)                    # no-op when already bf16

        # weight is already bf16 in VMEM -> no per-step cast
        y = jnp.dot(x_mxu, w_ref[...], preferred_element_type=jnp.float32)
        if bias:
            y = y + wb_ref[...]
        if gelu:
            # exact (erf-based) GELU, matching torch.nn.GELU default
            y = 0.5 * y * (1.0 + jax.lax.erf(y * inv_sqrt2))
        if residual:
            y = y + r_ref[...].astype(jnp.float32)
        o_ref[...] = y.astype(o_ref.dtype)

    return kernel


def _pick_row_tile(M, K, N, has_res):
    """Largest multiple-of-8 row tile whose double-buffered bf16 working set
    (x/out/residual tiles + resident weight) fits the per-generation VMEM
    budget; keeps v7x (64 MiB physical) and v5e's scoped limit safe."""
    if M <= _MAX_ROW_TILE:
        return M                                    # full-extent block
    w_bytes = 2 * K * N * 2                         # resident bf16 weight, 2 buffers
    per_row = 2 * 2 * (K + N + (N if has_res else 0))
    tm = (_VMEM_BUDGET - w_bytes) // max(per_row, 1)
    tm = max(64, min(_MAX_ROW_TILE, tm))
    return int(tm // 8 * 8)


def fused_linear(x2d, w, *, ln_g=None, ln_b=None, bias=None, gelu=False,
                 residual=None, out_dtype=_ACT_DTYPE):
    """y = [LN(x)] @ w [+ b] [-> GELU] [+ residual], row-tiled over M."""
    M, K = x2d.shape
    N = w.shape[1]
    ln = ln_g is not None
    has_bias = bias is not None
    has_res = residual is not None

    tm = _pick_row_tile(M, K, N, has_res)
    grid = (pl.cdiv(M, tm),)

    in_specs = [pl.BlockSpec((tm, K), lambda i: (i, 0))]
    args = [x2d]
    if ln:
        vec_k = pl.BlockSpec((1, K), lambda i: (0, 0))
        in_specs += [vec_k, vec_k]
        args += [ln_g.reshape(1, K), ln_b.reshape(1, K)]
    # weight: constant index map -> DMA'd once, resident across all row tiles
    in_specs.append(pl.BlockSpec((K, N), lambda i: (0, 0)))
    args.append(w)
    if has_bias:
        in_specs.append(pl.BlockSpec((1, N), lambda i: (0, 0)))
        args.append(bias.reshape(1, N))
    if has_res:
        in_specs.append(pl.BlockSpec((tm, N), lambda i: (i, 0)))
        args.append(residual)

    kernel = _make_fused_linear_kernel(ln=ln, bias=has_bias, gelu=gelu,
                                       residual=has_res)

    bytes_accessed = (x2d.size * x2d.dtype.itemsize
                      + w.size * w.dtype.itemsize
                      + M * N * jnp.dtype(out_dtype).itemsize
                      + (residual.size * residual.dtype.itemsize if has_res else 0))
    cost = pl.CostEstimate(flops=2 * M * K * N,
                           transcendentals=M * N if gelu else 0,
                           bytes_accessed=int(bytes_accessed))

    return pl.pallas_call(
        kernel,
        out_shape=jax.ShapeDtypeStruct((M, N), out_dtype),
        grid_spec=pltpu.PrefetchScalarGridSpec(
            num_scalar_prefetch=0,
            grid=grid,
            in_specs=in_specs,
            out_specs=pl.BlockSpec((tm, N), lambda i: (i, 0)),
        ),
        compiler_params=pltpu.CompilerParams(
            dimension_semantics=("parallel",),
            vmem_limit_bytes=_VMEM_LIMIT),
        cost_estimate=cost,
    )(*args)


# --------------------------------------------------------------------------
# Attention (+ DeepViT re-attention) kernel: lane-dense bf16 (N, 3*H*Dh) in,
# lane-dense bf16 (N, H*Dh) out, one batch element per grid step.
# --------------------------------------------------------------------------

def _make_attn_kernel(heads, dim_head):
    inner = heads * dim_head

    def kernel(qkv_ref, rw_ref, rg_ref, rb_ref, o_ref):
        qkv = qkv_ref[0]                                  # (N, 3*inner), bf16

        # ---- per-head softmax(q k^T); the softmax scale is pre-folded into
        #      the q-columns of the qkv weight (zero runtime cost) ----
        attn = []
        for h in range(heads):
            q_h = qkv[:, h * dim_head:(h + 1) * dim_head]
            k_h = qkv[:, inner + h * dim_head: inner + (h + 1) * dim_head]
            dots = jax.lax.dot_general(
                q_h, k_h, dimension_numbers=(((1,), (1,)), ((), ())),
                preferred_element_type=jnp.float32)       # (N, N) f32 acc
            dots = dots - jnp.max(dots, axis=-1, keepdims=True)
            e = jnp.exp(dots)
            inv_sum = pl.reciprocal(jnp.sum(e, axis=-1, keepdims=True),
                                    approx=True)          # EUP slot, VALU-free
            attn.append(e * inv_sum)

        # ---- DeepViT re-attention: mix heads with learned (H, H) weights ----
        # TODO(synk): the head mix stays on the VPU; the MXU formulation needs an
        # (H, N, N) -> (H, N*N) collapse that Mosaic cannot lower for N % 128 != 0.
        reattn = []
        for g in range(heads):
            acc = attn[0] * rw_ref[0, g]
            for h in range(1, heads):
                acc = acc + attn[h] * rw_ref[h, g]
            reattn.append(acc)

        # ---- LayerNorm over the head axis (per (i, j)), eps=1e-5 ----
        inv_h = 1.0 / heads
        mean = reattn[0]
        for g in range(1, heads):
            mean = mean + reattn[g]
        mean = mean * inv_h
        var = (reattn[0] - mean) ** 2
        for g in range(1, heads):
            var = var + (reattn[g] - mean) ** 2
        var = var * inv_h
        inv = jax.lax.rsqrt(var + _LN_EPS)

        # ---- attn @ v; per-head direct stores into the lane-dense output
        #      block (no concatenate copy) ----
        for h in range(heads):
            a_h = ((reattn[h] - mean) * inv * rg_ref[h] + rb_ref[h]
                   ).astype(_MXU_DTYPE)                   # (N, N)
            v_h = qkv[:, 2 * inner + h * dim_head: 2 * inner + (h + 1) * dim_head]
            out_h = jnp.dot(a_h, v_h, preferred_element_type=jnp.float32)
            o_ref[0, :, h * dim_head:(h + 1) * dim_head] = out_h.astype(o_ref.dtype)

    return kernel


def attention_core(qkv3, rw, rg, rb, *, heads, dim_head):
    B, N, _ = qkv3.shape
    inner = heads * dim_head
    kernel = _make_attn_kernel(heads, dim_head)

    blk_in = pl.BlockSpec((1, N, 3 * inner), lambda b: (b, 0, 0))
    blk_out = pl.BlockSpec((1, N, inner), lambda b: (b, 0, 0))
    smem = pl.BlockSpec(memory_space=pltpu.MemorySpace.SMEM)

    cost = pl.CostEstimate(
        flops=4 * B * N * N * inner + 2 * B * heads * heads * N * N,
        transcendentals=B * heads * N * N,
        bytes_accessed=int(B * N * 4 * inner * qkv3.dtype.itemsize))

    # TODO(synk): for long sequences add a query-tile grid axis (flash-style
    # online softmax) so v7x's two TensorCores get work beyond the batch dim.
    return pl.pallas_call(
        kernel,
        out_shape=jax.ShapeDtypeStruct((B, N, inner), qkv3.dtype),
        grid_spec=pltpu.PrefetchScalarGridSpec(
            num_scalar_prefetch=0,
            grid=(B,),
            in_specs=[blk_in, smem, smem, smem],
            out_specs=blk_out,
        ),
        compiler_params=pltpu.CompilerParams(
            dimension_semantics=("parallel",),
            vmem_limit_bytes=_VMEM_LIMIT),
        cost_estimate=cost,
    )(qkv3, rw, rg, rb)


# --------------------------------------------------------------------------
# Parameter init (deterministic, synthetic). Weights/biases/LN vectors are
# stored bf16 in HBM; re-attention params stay f32 scalars (SMEM).
# --------------------------------------------------------------------------

def init_params(key, *, image_size, patch_size, channels, num_classes,
                dim, depth, heads, dim_head, mlp_dim):
    patch_dim = channels * patch_size ** 2
    inner_dim = heads * dim_head
    num_patches = (image_size // patch_size) ** 2
    q_scale = dim_head ** (-0.5)

    keys = list(jax.random.split(key, 8 + depth * 16))
    kit = iter(keys)

    def nrm(shape, scale=0.05, dtype=_MXU_DTYPE):
        return (scale * jax.random.normal(next(kit), shape)).astype(dtype)

    params = {
        "patch_w": nrm((patch_dim, dim)),
        "patch_b": nrm((dim,)),
        "pos_embedding": nrm((1, num_patches + 1, dim), scale=0.02),
        "cls_token": nrm((1, 1, dim), scale=0.02),
        "head_ln_g": jnp.ones((dim,), _MXU_DTYPE),
        "head_ln_b": jnp.zeros((dim,), _MXU_DTYPE),
        "head_w": nrm((dim, num_classes)),
        "head_b": nrm((num_classes,)),
        "layers": [],
    }
    for _ in range(depth):
        qkv_w = 0.05 * jax.random.normal(next(kit), (dim, inner_dim * 3))
        # fold the softmax scale (dim_head**-0.5) into the q columns (free at runtime)
        qkv_w = qkv_w.at[:, :inner_dim].multiply(q_scale)
        params["layers"].append({
            "ln1_g": jnp.ones((dim,), _MXU_DTYPE),
            "ln1_b": jnp.zeros((dim,), _MXU_DTYPE),
            "qkv_w": qkv_w.astype(_MXU_DTYPE),                  # to_qkv (no bias)
            "reattn_w": jax.random.normal(next(kit), (heads, heads), jnp.float32),
            "reattn_g": jnp.ones((heads,), jnp.float32),        # LayerNorm(heads)
            "reattn_b": jnp.zeros((heads,), jnp.float32),
            "out_w": nrm((inner_dim, dim)),
            "out_b": nrm((dim,)),
            "ln2_g": jnp.ones((dim,), _MXU_DTYPE),
            "ln2_b": jnp.zeros((dim,), _MXU_DTYPE),
            "ff_w1": nrm((dim, mlp_dim)),
            "ff_b1": nrm((mlp_dim,)),
            "ff_w2": nrm((mlp_dim, dim)),
            "ff_b2": nrm((dim,)),
        })
    return params


# --------------------------------------------------------------------------
# DeepViT forward (layout glue in XLA, all compute in fused Pallas kernels)
# --------------------------------------------------------------------------

def deepvit_forward(params, img, *, patch_size, heads, dim_head, pool="cls"):
    B, C, H, W = img.shape
    p = patch_size
    hh, ww = H // p, W // p
    dim = params["patch_w"].shape[1]
    inner = heads * dim_head

    # Rearrange 'b c (h p1) (w p2) -> b (h w) (p1 p2 c)'  (one-off layout glue)
    x = img.reshape(B, C, hh, p, ww, p)
    x = x.transpose(0, 2, 4, 3, 5, 1)                       # b h w p1 p2 c
    n = hh * ww
    x = x.reshape(B * n, p * p * C).astype(_ACT_DTYPE)

    # Patch embedding (Linear) -> bf16 activations from here on
    x = fused_linear(x, params["patch_w"], bias=params["patch_b"])
    x = x.reshape(B, n, dim)

    # cls token + positional embedding (dropout p=0 -> identity)
    cls = jnp.broadcast_to(params["cls_token"], (B, 1, dim))
    x = jnp.concatenate([cls, x], axis=1)
    x = x + params["pos_embedding"][:, : n + 1]
    seq = n + 1
    x2d = x.reshape(B * seq, dim)

    for layer in params["layers"]:
        # --- Residual(PreNorm(Attention)) ---
        # ln1 + to_qkv fused; attention consumes fused qkv lane-dense;
        # out-projection + residual add fused.
        qkv = fused_linear(x2d, layer["qkv_w"],
                           ln_g=layer["ln1_g"], ln_b=layer["ln1_b"])
        attn_out = attention_core(qkv.reshape(B, seq, 3 * inner),
                                  layer["reattn_w"], layer["reattn_g"],
                                  layer["reattn_b"],
                                  heads=heads, dim_head=dim_head)
        x2d = fused_linear(attn_out.reshape(B * seq, inner), layer["out_w"],
                           bias=layer["out_b"], residual=x2d)

        # --- Residual(PreNorm(FeedForward)) ---
        # ln2 + ff_w1 + GELU fused; ff_w2 + residual add fused.
        h1 = fused_linear(x2d, layer["ff_w1"],
                          ln_g=layer["ln2_g"], ln_b=layer["ln2_b"],
                          bias=layer["ff_b1"], gelu=True)
        x2d = fused_linear(h1, layer["ff_w2"],
                           bias=layer["ff_b2"], residual=x2d)

    x = x2d.reshape(B, seq, dim)
    x_pool = jnp.mean(x, axis=1) if pool == "mean" else x[:, 0]

    # mlp_head: LayerNorm + Linear fused; logits kept in f32
    logits = fused_linear(x_pool, params["head_w"],
                          ln_g=params["head_ln_g"], ln_b=params["head_ln_b"],
                          bias=params["head_b"], out_dtype=jnp.float32)
    return logits


# --------------------------------------------------------------------------

if __name__ == "__main__":
    # Small DeepViT config
    image_size = 16
    patch_size = 4
    channels = 3
    num_classes = 10
    dim = 32
    depth = 2
    heads = 4
    dim_head = 8
    mlp_dim = 64
    batch = 2

    root = jax.random.PRNGKey(0)
    k_params, k_img = jax.random.split(root)

    params = init_params(
        k_params,
        image_size=image_size, patch_size=patch_size, channels=channels,
        num_classes=num_classes, dim=dim, depth=depth, heads=heads,
        dim_head=dim_head, mlp_dim=mlp_dim,
    )

    img = jax.random.normal(k_img, (batch, channels, image_size, image_size),
                            dtype=jnp.float32)  # NCHW, like PyTorch

    logits = deepvit_forward(params, img, patch_size=patch_size,
                             heads=heads, dim_head=dim_head, pool="cls")
    logits = jax.block_until_ready(logits)
    assert logits.shape == (batch, num_classes)
    assert jnp.all(jnp.isfinite(logits))
    print("KERNEL_OK")
</pallas_src>

<mosaic_0001>
module attributes {stable_mosaic.version = 11 : i64} {
  func.func @kernel(%arg0: i32, %arg1: memref<32x48xbf16, #tpu.memory_space<vmem>>, %arg2: memref<48x32xbf16, #tpu.memory_space<vmem>>, %arg3: memref<1x32xbf16, #tpu.memory_space<vmem>>, %arg4: memref<32x32xbf16, #tpu.memory_space<vmem>>) attributes {dimension_semantics = [#tpu.dimension_semantics<parallel>], iteration_bounds = array<i64: 1>, scalar_prefetch = 0 : i64, scratch_operands = 0 : i64, tpu.core_type = #tpu.core_type<tc>, window_params = [{transform_indices = @transform_0, window_bounds = array<i64: 32, 48>}, {pipeline_mode = #tpu.pipeline_mode<synchronous>, transform_indices = @transform_1, window_bounds = array<i64: 48, 32>}, {pipeline_mode = #tpu.pipeline_mode<synchronous>, transform_indices = @transform_2, window_bounds = array<i64: 1, 32>}, {transform_indices = @transform_3, window_bounds = array<i64: 32, 32>}]} {
    %c0 = arith.constant 0 : index
    %c0_0 = arith.constant 0 : index
    %0 = vector.load %arg1[%c0, %c0_0] : memref<32x48xbf16, #tpu.memory_space<vmem>>, vector<32x48xbf16>
    %c0_1 = arith.constant 0 : index
    %c0_2 = arith.constant 0 : index
    %1 = vector.load %arg2[%c0_1, %c0_2] : memref<48x32xbf16, #tpu.memory_space<vmem>>, vector<48x32xbf16>
    %cst = arith.constant dense<0.000000e+00> : vector<32x32xf32>
    %2 = tpu.matmul %0, %1, %cst {dimension_numbers = #tpu.dot_dimension_numbers<[1], [0], [0], [1], [0, 0, 1, 1], [], []>} : vector<32x48xbf16>, vector<48x32xbf16>, vector<32x32xf32> -> vector<32x32xf32>
    %c0_3 = arith.constant 0 : index
    %c0_4 = arith.constant 0 : index
    %3 = vector.load %arg3[%c0_3, %c0_4] : memref<1x32xbf16, #tpu.memory_space<vmem>>, vector<1x32xbf16>
    %4 = arith.extf %3 : vector<1x32xbf16> to vector<1x32xf32>
    %5 = vector.broadcast %4 : vector<1x32xf32> to vector<32x32xf32>
    %6 = arith.addf %2, %5 : vector<32x32xf32>
    %7 = arith.truncf %6 : vector<32x32xf32> to vector<32x32xbf16>
    %c0_5 = arith.constant 0 : index
    %c0_6 = arith.constant 0 : index
    %8 = vector.load %arg4[%c0_5, %c0_6] : memref<32x32xbf16, #tpu.memory_space<vmem>>, vector<32x32xbf16>
    tpu.vector_store %arg4[%c0_5, %c0_6], %7 {strides = array<i32>} : memref<32x32xbf16, #tpu.memory_space<vmem>>, vector<32x32xbf16>,
    return
  }
  func.func @transform_0(%arg0: i32) -> (i32, i32) {
    %c0_i32 = arith.constant 0 : i32
    %c0_i32_0 = arith.constant 0 : i32
    return %arg0, %c0_i32 : i32, i32
  }
  func.func @transform_1(%arg0: i32) -> (i32, i32) {
    %c0_i32 = arith.constant 0 : i32
    %c0_i32_0 = arith.constant 0 : i32
    %c0_i32_1 = arith.constant 0 : i32
    return %c0_i32, %c0_i32_0 : i32, i32
  }
  func.func @transform_2(%arg0: i32) -> (i32, i32) {
    %c0_i32 = arith.constant 0 : i32
    %c0_i32_0 = arith.constant 0 : i32
    %c0_i32_1 = arith.constant 0 : i32
    return %c0_i32, %c0_i32_0 : i32, i32
  }
  func.func @transform_3(%arg0: i32) -> (i32, i32) {
    %c0_i32 = arith.constant 0 : i32
    %c0_i32_0 = arith.constant 0 : i32
    return %arg0, %c0_i32 : i32, i32
  }
}

</mosaic_0001>

<bundles_post_ra>
// kernel: tpu_custom_call.1
= control target key start
LH: loop header
LB: loop body
LE: loop exit
PB: predicated region body
PF: predicated region fallthrough
CT: control target
= control target key end

     0   :  { %8 = vsyncpa [#allocation3], 0  ;;  %s423_s0 = inlined_call_operand.hbm [shape: bf16[32,48], index: 0, kind: input, shape index: {}]   ;;  %s424_s1 = inlined_call_operand.hbm [shape: bf16[48,32], index: 1, kind: input, shape index: {}]   ;;  %s425_s2 = inlined_call_operand.hbm [shape: bf16[1,32], index: 2, kind: input, shape index: {}]   ;;  %s426_s3 = inlined_call_operand.hbm [shape: bf16[32,32], index: 3, kind: output, shape index: {}]  }
   0x1   :  { %9 = vsyncpa [#allocation6], 0 }
   0x2   :  { %10 = vsyncpa [#allocation4], 0  ;;  %s329_s12 = smov [#allocation5]   ;;  %s330_s14 = smov [#allocation2]  }
   0x3   :  { %s28_s13 = sshll.u32 %s329_s12, 4  ;;  %s16_s15 = sshll.u32 %s330_s14, 4  ;;  %s29_s13 = int_to_ptr.vmem [resolvable:$true] %s28_s13  ;;  %s355_s15 = int_to_ptr.vmem [resolvable:$true] %s16_s15 }
   0x4   :  { %s235_s18 = scalar_lea.hbm %s424_s1, 384 }
   0x5   :  { %p236_p0 = scmp.ne.s32.totalorder %s424_s1, %s235_s18  ;;  %p239_p1 = scmp.lt.u32.totalorder %s235_s18, %s424_s1 }
   0x7   :  { %p241_p2 = pnand %p239_p1, %p236_p0 }
   0x9   :  { %244 = shalt.err (!%p241_p2)
}
   0xa   :  { %s245_s23 = scalar_lea.vmem %s29_s13, 384  ;;  %p250_p4 = scmp.lt.s32.totalorder %s29_s13, %s29_s13 }
   0xb   :  { %p246_p3 = scmp.ne.s32.totalorder %s29_s13, %s245_s23  ;;  %p251_p5 = scmp.lt.s32.totalorder %s245_s23, %s245_s23 }
   0xd   :  { %p252_p6 = por %p251_p5, %p250_p4 }
   0xf   :  { %p253_p7 = pnand %p252_p6, %p246_p3 }
  0x11   :  { %256 = shalt.err (!%p253_p7)
}
  0x12   :  { %s331_s24 = smov 64   ;;  %s332_s25 = smov 4  }
  0x13   :  { %34 = dma.hbm_to_vmem [thread:$0]  %s424_s1, 384, %s29_s13, [#allocation6], %s331_s24, %s331_s24, %s332_s25  }
  0x14   :  { %s257_s30 = scalar_lea.hbm %s423_s0, 256 }
  0x15   :  { %p258_p8 = scmp.ne.s32.totalorder %s423_s0, %s257_s30  ;;  %p261_p9 = scmp.lt.u32.totalorder %s257_s30, %s423_s0 }
  0x17   :  { %p263_p10 = pnand %p261_p9, %p258_p8 }
  0x19   :  { %266 = shalt.err (!%p263_p10)
}
  0x1a   :  { %s267_s8 = scalar_lea.vmem %s355_s15, 256  ;;  %p272_p12 = scmp.lt.s32.totalorder %s355_s15, %s355_s15 }
  0x1b   :  { %p268_p11 = scmp.ne.s32.totalorder %s355_s15, %s267_s8  ;;  %p273_p13 = scmp.lt.s32.totalorder %s267_s8, %s267_s8 }
  0x1d   :  { %p274_p0 = por %p273_p13, %p272_p12 }
  0x1f   :  { %p275_p1 = pnand %p274_p0, %p268_p11 }
  0x21   :  { %278 = shalt.err (!%p275_p1)
}
  0x22   :  { %22 = dma.hbm_to_vmem [thread:$0]  %s423_s0, 256, %s355_s15, [#allocation3], %s331_s24, %s331_s24, %s332_s25  }
  0x23   :  { %s333_s10 = smov [#allocation7]   ;;  %s279_s14 = scalar_lea.hbm %s425_s2, 16 }
  0x24   :  { %s41_s11 = sshll.u32 %s333_s10, 4  ;;  %p280_p2 = scmp.ne.s32.totalorder %s425_s2, %s279_s14  ;;  %s42_s11 = int_to_ptr.vmem [resolvable:$true] %s41_s11 }
  0x25   :  { %p283_p3 = scmp.lt.u32.totalorder %s279_s14, %s425_s2 }
  0x27   :  { %p285_p4 = pnand %p283_p3, %p280_p2 }
  0x29   :  { %288 = shalt.err (!%p285_p4)
}
  0x2a   :  { %s289_s20 = scalar_lea.vmem %s42_s11, 16  ;;  %s293_s0 = scalar_lea.vmem %s42_s11, 32 }
  0x2b   :  { %p290_p5 = scmp.ne.s32.totalorder %s42_s11, %s289_s20  ;;  %p294_p6 = scmp.lt.s32.totalorder %s42_s11, %s42_s11 }
  0x2c   :  { %p295_p7 = scmp.lt.s32.totalorder %s293_s0, %s289_s20 }
  0x2e   :  { %p296_p8 = por %p295_p7, %p294_p6 }
  0x30   :  { %p297_p9 = pnand %p296_p8, %p290_p5 }
  0x32   :  { %300 = shalt.err (!%p297_p9)
}
  0x33   :  { %44 = dma.hbm_to_vmem [thread:$0]  %s425_s2, 16, %s42_s11, [#allocation6]  }
  0x34   :  { %323 = dma.done.wait [#allocation3], 256  }
  0x35   :  { %324 = vsyncadd [#allocation3], 4294967040 }
  0x36   :  { %325 = dma.done.wait [#allocation6], 400  }
  0x37   :  { %326 = vsyncadd [#allocation6], 4294966896  ;;  %v230_v0 = vld [vmem:[#allocation5] sm:$0xff]   ;;  %v231_v1 = vld [vmem:[#allocation5 + $0x8] sm:$0xff]   ;;  %vm99_vm0 = vcmask 392192   ;;  %v67_v5 = vlaneseq  ;;  %vm171_vm1 = vcmask 257024  }
  0x38   :  { %214 = vmatprep.subr.bf16.mxu0 %v230_v0  ;;  %v233_v2 = vld [vmem:[#allocation2] sm:$0xff]   ;;  %v234_v4 = vld [vmem:[#allocation2 + $0x8] sm:$0xff]   ;;  %s334_s2 = smov [#allocation8]  }
  0x39   :  { %215 = vmatpush3.bf16.msra.mxu0 %v230_v0  ;;  %v232_v3 = vld [vmem:[#allocation5 + $0x10] sm:$0xff]   ;;  %220 = vmatprep.mubr.msk.bf16.mxu0 %vm99_vm0, %v233_v2  ;;  %v68_v6 = vshrl.u32 %v67_v5, 7  ;;  %v65_v7 = vld [vmem:[#allocation7] sm:$0x1]  ;;  %s181_s22 = sshll.u32 %s334_s2, 4  ;;  %s182_s22 = int_to_ptr.vmem [resolvable:$true] %s181_s22 }
  0x3a   :  { %216 = vmatprep.subr.bf16.mxu0 %v231_v1  ;;  %v66_v8 = vunpack.c.l.bf16 %v65_v7  ;;  %s301_s23 = scalar_lea.vmem %s182_s22, 256  ;;  %p306_p11 = scmp.lt.s32.totalorder %s182_s22, %s182_s22 }
  0x3b   :  { %v69_v9 = vsub.s32 0, %v68_v6  ;;  %p302_p10 = scmp.ne.s32.totalorder %s182_s22, %s301_s23  ;;  %p307_p12 = scmp.lt.s32.totalorder %s301_s23, %s301_s23 }
  0x3d   :  { %217 = vmatpush3.bf16.msra.mxu0 %v231_v1  ;;  %v70_v10 = vrot.slane %v66_v8, %v69_v9  ;;  %p308_p13 = por %p307_p12, %p306_p11 }
  0x3e   :  { %218 = vmatprep.subr.bf16.mxu0 %v232_v3 }
  0x3f   :  { %p309_p0 = pnand %p308_p13, %p302_p10 }
  0x41   :  { %219 = vmatpush3.bf16.msra.mxu0 %v232_v3 }
  0x44   :  { %221 = vmatmul.mubr.msk.bf16.vlgmr.msra.gmra.mrb[0].mxu0 %vm99_vm0, %v234_v4 }
 0x117   :  { %v222_v11 = vpop.f32.mrb[0].mxu0 }
 0x118   :  { %v149_v12 = vadd.f32 %v222_v11, %v70_v10  ;;  %v140_v13 = vpop.f32.mrb[1].mxu0 }
 0x119   :  { %v141_v14 = vadd.f32 %v140_v13, %v70_v10  ;;  %v223_v15 = vpop.f32.mrb[2].mxu0 }
 0x11a   :  { %v207_v16 = vpack.c.bf16 %v149_v12, %v149_v12  ;;  %v152_v17 = vadd.f32 %v223_v15, %v70_v10  ;;  %v143_v18 = vpop.f32.mrb[3].mxu0 }
 0x11b   :  { %v205_v19 = vpack.c.bf16 %v141_v14, %v141_v14  ;;  %v144_v20 = vadd.f32 %v143_v18, %v70_v10 }
 0x11c   :  { %174 = vst.msk [vmem:[#allocation8 + $0x8] sm:$0xf] %vm171_vm1, %v207_v16  ;;  %v208_v21 = vpack.c.bf16 %v152_v17, %v152_v17 }
 0x11d   :  { %172 = vst.msk [vmem:[#allocation8] sm:$0xf] %vm171_vm1, %v205_v19  ;;  %v206_v22 = vpack.c.bf16 %v144_v20, %v144_v20 }
 0x11e   :  { %175 = vst.msk [vmem:[#allocation8 + $0xc] sm:$0xf] %vm171_vm1, %v208_v21 }
 0x11f   :  { %173 = vst.msk [vmem:[#allocation8 + $0x4] sm:$0xf] %vm171_vm1, %v206_v22 }
 0x120   :  { %312 = shalt.err (!%p309_p0)
}
 0x121   :  { %s313_s28 = scalar_lea.hbm %s426_s3, 256 }
 0x122   :  { %p314_p1 = scmp.ne.s32.totalorder %s426_s3, %s313_s28  ;;  %p317_p2 = scmp.lt.u32.totalorder %s313_s28, %s426_s3 }
 0x124   :  { %p319_p3 = pnand %p317_p2, %p314_p1 }
 0x126   :  { %322 = shalt.err (!%p319_p3)
}
 0x127   :  { %187 = dma.vmem_to_hbm [thread:$0]  %s182_s22, 256, %s426_s3, [#allocation4], %s331_s24, %s331_s24, %s332_s25  }
 0x128   :  { %327 = dma.done.wait [#allocation4], 256  }
 0x129   :  { %328 = vsyncadd [#allocation4], 4294967040 }
 0x12a   :  { %191 = vsyncpa [#allocation3], 1 }
 0x12b   :  { %192 = vsyncpa [#allocation6], 1 }
 0x12c   :  { %193 = vsyncpa [#allocation4], 1 }

</bundles_post_ra>
